<compile_context>
chip_gen: v5e
topology: v5e:2x2
jax: 0.10.0
libtpu: 0.0.40
codegen_flags: <defaults>
</compile_context>

<pallas_src>
import functools

import jax
import jax.numpy as jnp
from jax.experimental import pallas as pl
from jax.experimental.pallas import tpu as pltpu


_LANE = 128  # vreg lane width


def _round_up(x, m):
    return (x + m - 1) // m * m


def _pad_to(arr, shape):
    pads = [(0, t - s) for s, t in zip(arr.shape, shape)]
    if all(p == (0, 0) for p in pads):
        return arr
    return jnp.pad(arr, pads)


def _chip_config():
    """Best-effort TPU-generation probe; falls back to conservative settings."""
    kind = ""
    try:
        kind = jax.devices()[0].device_kind.lower()
    except Exception:
        pass
    modern = ("v6" in kind) or ("v7" in kind) or ("7x" in kind)
    try:
        vmem_cap = int(pltpu.get_tpu_info().vmem_capacity_bytes)
    except Exception:
        vmem_cap = 64 * 1024 * 1024  # conservative (v7x per-TC VMEM)
    return {
        "mxu_m": 256 if modern else 128,   # MXU systolic M dim (v6e/v7x vs v5e)
        "tanh_bf16": modern,               # bf16 EUP exists only on v6e/v7x
        "vmem_limit": min(vmem_cap * 3 // 4, 100 * 1024 * 1024),
    }


def _pick_row_tiling(batch, row_tile, mxu_m):
    """Row tile TR (multiple of 16) and padded row count Rp.

    For batch > 16 we force >= 2 row blocks so the "parallel" grid axis can
    shard across v7x's 2 TensorCores; large batches align TR to the MXU M dim.
    """
    if batch <= 16:
        tr = 16
    else:
        half = -(-batch // 2)  # ceil(batch / 2) -> at least 2 grid steps
        align = mxu_m if half >= mxu_m else 16
        tr = min(_round_up(half, align), row_tile)
    rp = _round_up(max(batch, tr), tr)
    return tr, rp


# ---------------------------------------------------------------------------
# Fused kernel: synthetic encoder (CLS rows only) + classification head
# ---------------------------------------------------------------------------
def _fused_cls_head_kernel(cls_ref, w_enc_ref, b_enc_ref,
                           w_dense_ref, b_dense_ref,
                           w_out_ref, b_out_ref, o_ref, *, tanh_bf16):
    """cls_ref: (TR, Hp) f32; w_* bf16; b_* (1, X) f32; o_ref: (TR, Lp) f32.

    encoder : h = tanh(cls @ W_enc + b_enc)          (per-token stand-in)
    head    : x = dropout(h)                         identity (eval)
              x = tanh(x @ W_dense + b_dense)
              x = dropout(x)                         identity (eval)
              logits = x @ W_out + b_out
    """
    x = cls_ref[...].astype(jnp.bfloat16)            # bf16 MXU input, cast in-kernel

    h = jnp.dot(x, w_enc_ref[...], preferred_element_type=jnp.float32)
    h = h + b_enc_ref[...]                           # f32 bias add
    h = jnp.tanh(h.astype(jnp.bfloat16)) if tanh_bf16 else jnp.tanh(h).astype(jnp.bfloat16)

    h = jnp.dot(h, w_dense_ref[...], preferred_element_type=jnp.float32)
    h = h + b_dense_ref[...]
    h = jnp.tanh(h.astype(jnp.bfloat16)) if tanh_bf16 else jnp.tanh(h).astype(jnp.bfloat16)

    logits = jnp.dot(h, w_out_ref[...], preferred_element_type=jnp.float32)
    o_ref[...] = (logits + b_out_ref[...]).astype(o_ref.dtype)


# ---------------------------------------------------------------------------
# One-time parameter preparation (do NOT repeat per call)
# ---------------------------------------------------------------------------
def prepare_params(params):
    """Cast weights to bf16 and zero-pad to lane-dense shapes, once."""
    H = params["w_enc"].shape[0]
    L = params["w_out"].shape[1]
    Hp = _round_up(H, _LANE)
    Lp = _round_up(L, _LANE)
    return {
        "H": H, "L": L, "Hp": Hp, "Lp": Lp,
        "w_enc":   _pad_to(params["w_enc"].astype(jnp.bfloat16), (Hp, Hp)),
        "b_enc":   _pad_to(params["b_enc"].astype(jnp.float32), (1, Hp)),
        "w_dense": _pad_to(params["w_dense"].astype(jnp.bfloat16), (Hp, Hp)),
        "b_dense": _pad_to(params["b_dense"].astype(jnp.float32), (1, Hp)),
        "w_out":   _pad_to(params["w_out"].astype(jnp.bfloat16), (Hp, Lp)),
        "b_out":   _pad_to(params["b_out"].astype(jnp.float32), (1, Lp)),
    }


# ---------------------------------------------------------------------------
# Wrapper
# ---------------------------------------------------------------------------
def longformer_for_sequence_classification(x, attention_mask, params, *,
                                            row_tile=512):
    """x: (B, S, H) f32, attention_mask: (B, S) -> logits: (B, num_labels).

    attention_mask is accepted for API parity; the synthetic per-token encoder
    stand-in does not mix tokens, so it does not alter the output.
    `params` is ideally the output of prepare_params (auto-prepared otherwise).
    """
    del attention_mask
    if "Hp" not in params:                       # allow raw params, but prefer prep'd
        params = prepare_params(params)
    B, S, H = x.shape
    assert H == params["H"]
    L, Hp, Lp = params["L"], params["Hp"], params["Lp"]

    cfg = _chip_config()
    TR, Rp = _pick_row_tiling(B, row_tile, cfg["mxu_m"])

    # Per-call activation prep touches only the B CLS rows (f32 pad; bf16 cast
    # happens inside the kernel -> no extra bf16 HBM round trip).
    cls_p = _pad_to(x[:, 0, :], (Rp, Hp))

    row_map = lambda i: (i, 0)        # activation / logits row tiles
    const_map = lambda i: (0, 0)      # weights & biases stay VMEM-resident

    cost = pl.CostEstimate(
        flops=2 * Rp * (2 * Hp * Hp + Hp * Lp),
        transcendentals=2 * Rp * Hp,
        bytes_accessed=(2 * (2 * Hp * Hp + Hp * Lp)   # bf16 weights
                        + 4 * (2 * Hp + Lp)           # f32 biases
                        + 4 * Rp * Hp                 # f32 CLS rows in
                        + 4 * Rp * Lp),               # f32 logits out
    )

    kernel = functools.partial(_fused_cls_head_kernel, tanh_bf16=cfg["tanh_bf16"])

    def call(const_pipeline_mode):
        kw = {} if const_pipeline_mode is None else {"pipeline_mode": const_pipeline_mode}
        const_spec = lambda shape: pl.BlockSpec(shape, const_map, **kw)
        return pl.pallas_call(
            kernel,
            out_shape=jax.ShapeDtypeStruct((Rp, Lp), jnp.float32),
            grid_spec=pltpu.PrefetchScalarGridSpec(
                num_scalar_prefetch=0,
                grid=(Rp // TR,),
                in_specs=[
                    pl.BlockSpec((TR, Hp), row_map),
                    const_spec((Hp, Hp)), const_spec((1, Hp)),
                    const_spec((Hp, Hp)), const_spec((1, Hp)),
                    const_spec((Hp, Lp)), const_spec((1, Lp)),
                ],
                out_specs=pl.BlockSpec((TR, Lp), row_map),
            ),
            compiler_params=pltpu.CompilerParams(
                dimension_semantics=("parallel",),      # shard rows across TCs
                vmem_limit_bytes=cfg["vmem_limit"],     # gen-dependent limit
            ),
            cost_estimate=cost,
        )(cls_p, params["w_enc"], params["b_enc"], params["w_dense"],
          params["b_dense"], params["w_out"], params["b_out"])

    try:
        # Block-index-invariant operands single-buffered: halves weight VMEM.
        logits_p = call(pl.Buffered(1))
    except Exception:
        # TODO(synk): drop this fallback once pl.Buffered(1) is guaranteed by the
        # installed jax; default double-buffering is correct, just uses 2x VMEM.
        logits_p = call(None)

    return logits_p[:B, :L]


# ---------------------------------------------------------------------------
# Deterministic parameter init, pure-JAX reference, demo
# ---------------------------------------------------------------------------
def init_params(key, hidden_size, num_labels):
    ks = jax.random.split(key, 6)
    scale = 1.0 / jnp.sqrt(hidden_size)
    return {
        # synthetic encoder stand-in
        "w_enc": jax.random.normal(ks[0], (hidden_size, hidden_size), jnp.float32) * scale,
        "b_enc": jax.random.normal(ks[1], (1, hidden_size), jnp.float32) * 0.01,
        # classification head: dense (H -> H)
        "w_dense": jax.random.normal(ks[2], (hidden_size, hidden_size), jnp.float32) * scale,
        "b_dense": jax.random.normal(ks[3], (1, hidden_size), jnp.float32) * 0.01,
        # classification head: out_proj (H -> num_labels)
        "w_out": jax.random.normal(ks[4], (hidden_size, num_labels), jnp.float32) * scale,
        "b_out": jax.random.normal(ks[5], (1, num_labels), jnp.float32) * 0.01,
    }


def _reference_forward(x, params, tanh_bf16):
    """Plain-JAX reference of the FULL forward (full-sequence synthetic encoder,
    then CLS head), with the same bf16-in / f32-accumulate matmul policy."""
    bf = lambda a: a.astype(jnp.bfloat16)
    B, S, H = x.shape
    hs = jnp.dot(bf(x.reshape(B * S, H)), bf(params["w_enc"]),
                 preferred_element_type=jnp.float32) + params["b_enc"]
    hs = jnp.tanh(bf(hs)) if tanh_bf16 else bf(jnp.tanh(hs))
    cls = hs.reshape(B, S, H)[:, 0, :]
    h = jnp.dot(cls, bf(params["w_dense"]),
                preferred_element_type=jnp.float32) + params["b_dense"]
    h = jnp.tanh(bf(h)) if tanh_bf16 else bf(jnp.tanh(h))
    return jnp.dot(h, bf(params["w_out"]),
                   preferred_element_type=jnp.float32) + params["b_out"]


if __name__ == "__main__":
    B, S, H, L = 2, 8, 32, 4
    key = jax.random.PRNGKey(0)
    k_x, k_p = jax.random.split(key)

    # x: pre-embedded token representations (B, S, H); attention_mask: (B, S)
    x = jax.random.normal(k_x, (B, S, H), jnp.float32)
    attention_mask = jnp.ones((B, S), jnp.float32)
    params = init_params(k_p, H, L)

    # One-time weight prep (bf16 cast + lane padding) -- NOT repeated per call.
    prepped = prepare_params(params)

    logits = longformer_for_sequence_classification(x, attention_mask, prepped)
    logits = jax.block_until_ready(logits)

    tanh_bf16 = _chip_config()["tanh_bf16"]
    logits_ref = _reference_forward(x, params, tanh_bf16)

    assert logits.shape == (B, L)
    assert jnp.allclose(logits, logits_ref, atol=2e-2, rtol=2e-2), (
        float(jnp.max(jnp.abs(logits - logits_ref))))

    print("KERNEL_OK")
</pallas_src>

<mosaic_0001>
module attributes {stable_mosaic.version = 11 : i64} {
  func.func @_fused_cls_head_kernel(%arg0: i32, %arg1: memref<16x128xf32, #tpu.memory_space<vmem>>, %arg2: memref<128x128xbf16, #tpu.memory_space<vmem>>, %arg3: memref<1x128xf32, #tpu.memory_space<vmem>>, %arg4: memref<128x128xbf16, #tpu.memory_space<vmem>>, %arg5: memref<1x128xf32, #tpu.memory_space<vmem>>, %arg6: memref<128x128xbf16, #tpu.memory_space<vmem>>, %arg7: memref<1x128xf32, #tpu.memory_space<vmem>>, %arg8: memref<16x128xf32, #tpu.memory_space<vmem>>) attributes {dimension_semantics = [#tpu.dimension_semantics<parallel>], iteration_bounds = array<i64: 1>, scalar_prefetch = 0 : i64, scratch_operands = 0 : i64, tpu.core_type = #tpu.core_type<tc>, window_params = [{transform_indices = @transform_0, window_bounds = array<i64: 16, 128>}, {pipeline_mode = #tpu.pipeline_mode<synchronous>, transform_indices = @transform_1, window_bounds = array<i64: 128, 128>}, {pipeline_mode = #tpu.pipeline_mode<synchronous>, transform_indices = @transform_2, window_bounds = array<i64: 1, 128>}, {pipeline_mode = #tpu.pipeline_mode<synchronous>, transform_indices = @transform_3, window_bounds = array<i64: 128, 128>}, {pipeline_mode = #tpu.pipeline_mode<synchronous>, transform_indices = @transform_4, window_bounds = array<i64: 1, 128>}, {pipeline_mode = #tpu.pipeline_mode<synchronous>, transform_indices = @transform_5, window_bounds = array<i64: 128, 128>}, {pipeline_mode = #tpu.pipeline_mode<synchronous>, transform_indices = @transform_6, window_bounds = array<i64: 1, 128>}, {transform_indices = @transform_7, window_bounds = array<i64: 16, 128>}]} {
    %c0 = arith.constant 0 : index
    %c0_0 = arith.constant 0 : index
    %0 = vector.load %arg1[%c0, %c0_0] : memref<16x128xf32, #tpu.memory_space<vmem>>, vector<16x128xf32>
    %1 = arith.truncf %0 : vector<16x128xf32> to vector<16x128xbf16>
    %c0_1 = arith.constant 0 : index
    %c0_2 = arith.constant 0 : index
    %2 = vector.load %arg2[%c0_1, %c0_2] : memref<128x128xbf16, #tpu.memory_space<vmem>>, vector<128x128xbf16>
    %cst = arith.constant dense<0.000000e+00> : vector<16x128xf32>
    %3 = tpu.matmul %1, %2, %cst {dimension_numbers = #tpu.dot_dimension_numbers<[1], [0], [0], [1], [0, 0, 1, 1], [], []>} : vector<16x128xbf16>, vector<128x128xbf16>, vector<16x128xf32> -> vector<16x128xf32>
    %c0_3 = arith.constant 0 : index
    %c0_4 = arith.constant 0 : index
    %4 = vector.load %arg3[%c0_3, %c0_4] : memref<1x128xf32, #tpu.memory_space<vmem>>, vector<1x128xf32>
    %5 = vector.broadcast %4 : vector<1x128xf32> to vector<16x128xf32>
    %6 = arith.addf %3, %5 : vector<16x128xf32>
    %7 = math.tanh %6 : vector<16x128xf32>
    %8 = arith.truncf %7 : vector<16x128xf32> to vector<16x128xbf16>
    %c0_5 = arith.constant 0 : index
    %c0_6 = arith.constant 0 : index
    %9 = vector.load %arg4[%c0_5, %c0_6] : memref<128x128xbf16, #tpu.memory_space<vmem>>, vector<128x128xbf16>
    %cst_7 = arith.constant dense<0.000000e+00> : vector<16x128xf32>
    %10 = tpu.matmul %8, %9, %cst_7 {dimension_numbers = #tpu.dot_dimension_numbers<[1], [0], [0], [1], [0, 0, 1, 1], [], []>} : vector<16x128xbf16>, vector<128x128xbf16>, vector<16x128xf32> -> vector<16x128xf32>
    %c0_8 = arith.constant 0 : index
    %c0_9 = arith.constant 0 : index
    %11 = vector.load %arg5[%c0_8, %c0_9] : memref<1x128xf32, #tpu.memory_space<vmem>>, vector<1x128xf32>
    %12 = vector.broadcast %11 : vector<1x128xf32> to vector<16x128xf32>
    %13 = arith.addf %10, %12 : vector<16x128xf32>
    %14 = math.tanh %13 : vector<16x128xf32>
    %15 = arith.truncf %14 : vector<16x128xf32> to vector<16x128xbf16>
    %c0_10 = arith.constant 0 : index
    %c0_11 = arith.constant 0 : index
    %16 = vector.load %arg6[%c0_10, %c0_11] : memref<128x128xbf16, #tpu.memory_space<vmem>>, vector<128x128xbf16>
    %cst_12 = arith.constant dense<0.000000e+00> : vector<16x128xf32>
    %17 = tpu.matmul %15, %16, %cst_12 {dimension_numbers = #tpu.dot_dimension_numbers<[1], [0], [0], [1], [0, 0, 1, 1], [], []>} : vector<16x128xbf16>, vector<128x128xbf16>, vector<16x128xf32> -> vector<16x128xf32>
    %c0_13 = arith.constant 0 : index
    %c0_14 = arith.constant 0 : index
    %18 = vector.load %arg7[%c0_13, %c0_14] : memref<1x128xf32, #tpu.memory_space<vmem>>, vector<1x128xf32>
    %19 = vector.broadcast %18 : vector<1x128xf32> to vector<16x128xf32>
    %20 = arith.addf %17, %19 : vector<16x128xf32>
    %c0_15 = arith.constant 0 : index
    %c0_16 = arith.constant 0 : index
    %21 = vector.load %arg8[%c0_15, %c0_16] : memref<16x128xf32, #tpu.memory_space<vmem>>, vector<16x128xf32>
    tpu.vector_store %arg8[%c0_15, %c0_16], %20 {strides = array<i32>} : memref<16x128xf32, #tpu.memory_space<vmem>>, vector<16x128xf32>,
    return
  }
  func.func @transform_0(%arg0: i32) -> (i32, i32) {
    %c0_i32 = arith.constant 0 : i32
    %c0_i32_0 = arith.constant 0 : i32
    return %arg0, %c0_i32 : i32, i32
  }
  func.func @transform_1(%arg0: i32) -> (i32, i32) {
    %c0_i32 = arith.constant 0 : i32
    %c0_i32_0 = arith.constant 0 : i32
    %c0_i32_1 = arith.constant 0 : i32
    return %c0_i32, %c0_i32_0 : i32, i32
  }
  func.func @transform_2(%arg0: i32) -> (i32, i32) {
    %c0_i32 = arith.constant 0 : i32
    %c0_i32_0 = arith.constant 0 : i32
    %c0_i32_1 = arith.constant 0 : i32
    return %c0_i32, %c0_i32_0 : i32, i32
  }
  func.func @transform_3(%arg0: i32) -> (i32, i32) {
    %c0_i32 = arith.constant 0 : i32
    %c0_i32_0 = arith.constant 0 : i32
    %c0_i32_1 = arith.constant 0 : i32
    return %c0_i32, %c0_i32_0 : i32, i32
  }
  func.func @transform_4(%arg0: i32) -> (i32, i32) {
    %c0_i32 = arith.constant 0 : i32
    %c0_i32_0 = arith.constant 0 : i32
    %c0_i32_1 = arith.constant 0 : i32
    return %c0_i32, %c0_i32_0 : i32, i32
  }
  func.func @transform_5(%arg0: i32) -> (i32, i32) {
    %c0_i32 = arith.constant 0 : i32
    %c0_i32_0 = arith.constant 0 : i32
    %c0_i32_1 = arith.constant 0 : i32
    return %c0_i32, %c0_i32_0 : i32, i32
  }
  func.func @transform_6(%arg0: i32) -> (i32, i32) {
    %c0_i32 = arith.constant 0 : i32
    %c0_i32_0 = arith.constant 0 : i32
    %c0_i32_1 = arith.constant 0 : i32
    return %c0_i32, %c0_i32_0 : i32, i32
  }
  func.func @transform_7(%arg0: i32) -> (i32, i32) {
    %c0_i32 = arith.constant 0 : i32
    %c0_i32_0 = arith.constant 0 : i32
    return %arg0, %c0_i32 : i32, i32
  }
}

module attributes {stable_mosaic.version = 11 : i64} {
  func.func @_fused_cls_head_kernel(%arg0: i32, %arg1: memref<16x128xf32, #tpu.memory_space<vmem>>, %arg2: memref<128x128xbf16, #tpu.memory_space<vmem>>, %arg3: memref<1x128xf32, #tpu.memory_space<vmem>>, %arg4: memref<128x128xbf16, #tpu.memory_space<vmem>>, %arg5: memref<1x128xf32, #tpu.memory_space<vmem>>, %arg6: memref<128x128xbf16, #tpu.memory_space<vmem>>, %arg7: memref<1x128xf32, #tpu.memory_space<vmem>>, %arg8: memref<16x128xf32, #tpu.memory_space<vmem>>) attributes {dimension_semantics = [#tpu.dimension_semantics<parallel>], iteration_bounds = array<i64: 1>, scalar_prefetch = 0 : i64, scratch_operands = 0 : i64, tpu.core_type = #tpu.core_type<tc>, window_params = [{transform_indices = @transform_0, window_bounds = array<i64: 16, 128>}, {pipeline_mode = #tpu.pipeline_mode<synchronous>, transform_indices = @transform_1, window_bounds = array<i64: 128, 128>}, {pipeline_mode = #tpu.pipeline_mode<synchronous>, transform_indices = @transform_2, window_bounds = array<i64: 1, 128>}, {pipeline_mode = #tpu.pipeline_mode<synchronous>, transform_indices = @transform_3, window_bounds = array<i64: 128, 128>}, {pipeline_mode = #tpu.pipeline_mode<synchronous>, transform_indices = @transform_4, window_bounds = array<i64: 1, 128>}, {pipeline_mode = #tpu.pipeline_mode<synchronous>, transform_indices = @transform_5, window_bounds = array<i64: 128, 128>}, {pipeline_mode = #tpu.pipeline_mode<synchronous>, transform_indices = @transform_6, window_bounds = array<i64: 1, 128>}, {transform_indices = @transform_7, window_bounds = array<i64: 16, 128>}]} {
    %c0 = arith.constant 0 : index
    %c0_0 = arith.constant 0 : index
    %0 = vector.load %arg1[%c0, %c0_0] : memref<16x128xf32, #tpu.memory_space<vmem>>, vector<16x128xf32>
    %1 = arith.truncf %0 : vector<16x128xf32> to vector<16x128xbf16>
    %c0_1 = arith.constant 0 : index
    %c0_2 = arith.constant 0 : index
    %2 = vector.load %arg2[%c0_1, %c0_2] : memref<128x128xbf16, #tpu.memory_space<vmem>>, vector<128x128xbf16>
    %cst = arith.constant dense<0.000000e+00> : vector<16x128xf32>
    %3 = tpu.matmul %1, %2, %cst {dimension_numbers = #tpu.dot_dimension_numbers<[1], [0], [0], [1], [0, 0, 1, 1], [], []>} : vector<16x128xbf16>, vector<128x128xbf16>, vector<16x128xf32> -> vector<16x128xf32>
    %c0_3 = arith.constant 0 : index
    %c0_4 = arith.constant 0 : index
    %4 = vector.load %arg3[%c0_3, %c0_4] : memref<1x128xf32, #tpu.memory_space<vmem>>, vector<1x128xf32>
    %5 = vector.broadcast %4 : vector<1x128xf32> to vector<16x128xf32>
    %6 = arith.addf %3, %5 : vector<16x128xf32>
    %7 = math.tanh %6 : vector<16x128xf32>
    %8 = arith.truncf %7 : vector<16x128xf32> to vector<16x128xbf16>
    %c0_5 = arith.constant 0 : index
    %c0_6 = arith.constant 0 : index
    %9 = vector.load %arg4[%c0_5, %c0_6] : memref<128x128xbf16, #tpu.memory_space<vmem>>, vector<128x128xbf16>
    %cst_7 = arith.constant dense<0.000000e+00> : vector<16x128xf32>
    %10 = tpu.matmul %8, %9, %cst_7 {dimension_numbers = #tpu.dot_dimension_numbers<[1], [0], [0], [1], [0, 0, 1, 1], [], []>} : vector<16x128xbf16>, vector<128x128xbf16>, vector<16x128xf32> -> vector<16x128xf32>
    %c0_8 = arith.constant 0 : index
    %c0_9 = arith.constant 0 : index
    %11 = vector.load %arg5[%c0_8, %c0_9] : memref<1x128xf32, #tpu.memory_space<vmem>>, vector<1x128xf32>
    %12 = vector.broadcast %11 : vector<1x128xf32> to vector<16x128xf32>
    %13 = arith.addf %10, %12 : vector<16x128xf32>
    %14 = math.tanh %13 : vector<16x128xf32>
    %15 = arith.truncf %14 : vector<16x128xf32> to vector<16x128xbf16>
    %c0_10 = arith.constant 0 : index
    %c0_11 = arith.constant 0 : index
    %16 = vector.load %arg6[%c0_10, %c0_11] : memref<128x128xbf16, #tpu.memory_space<vmem>>, vector<128x128xbf16>
    %cst_12 = arith.constant dense<0.000000e+00> : vector<16x128xf32>
    %17 = tpu.matmul %15, %16, %cst_12 {dimension_numbers = #tpu.dot_dimension_numbers<[1], [0], [0], [1], [0, 0, 1, 1], [], []>} : vector<16x128xbf16>, vector<128x128xbf16>, vector<16x128xf32> -> vector<16x128xf32>
    %c0_13 = arith.constant 0 : index
    %c0_14 = arith.constant 0 : index
    %18 = vector.load %arg7[%c0_13, %c0_14] : memref<1x128xf32, #tpu.memory_space<vmem>>, vector<1x128xf32>
    %19 = vector.broadcast %18 : vector<1x128xf32> to vector<16x128xf32>
    %20 = arith.addf %17, %19 : vector<16x128xf32>
    %c0_15 = arith.constant 0 : index
    %c0_16 = arith.constant 0 : index
    %21 = vector.load %arg8[%c0_15, %c0_16] : memref<16x128xf32, #tpu.memory_space<vmem>>, vector<16x128xf32>
    tpu.vector_store %arg8[%c0_15, %c0_16], %20 {strides = array<i32>} : memref<16x128xf32, #tpu.memory_space<vmem>>, vector<16x128xf32>,
    return
  }
  func.func @transform_0(%arg0: i32) -> (i32, i32) {
    %c0_i32 = arith.constant 0 : i32
    %c0_i32_0 = arith.constant 0 : i32
    return %arg0, %c0_i32 : i32, i32
  }
  func.func @transform_1(%arg0: i32) -> (i32, i32) {
    %c0_i32 = arith.constant 0 : i32
    %c0_i32_0 = arith.constant 0 : i32
    %c0_i32_1 = arith.constant 0 : i32
    return %c0_i32, %c0_i32_0 : i32, i32
  }
  func.func @transform_2(%arg0: i32) -> (i32, i32) {
    %c0_i32 = arith.constant 0 : i32
    %c0_i32_0 = arith.constant 0 : i32
    %c0_i32_1 = arith.constant 0 : i32
    return %c0_i32, %c0_i32_0 : i32, i32
  }
  func.func @transform_3(%arg0: i32) -> (i32, i32) {
    %c0_i32 = arith.constant 0 : i32
    %c0_i32_0 = arith.constant 0 : i32
    %c0_i32_1 = arith.constant 0 : i32
    return %c0_i32, %c0_i32_0 : i32, i32
  }
  func.func @transform_4(%arg0: i32) -> (i32, i32) {
    %c0_i32 = arith.constant 0 : i32
    %c0_i32_0 = arith.constant 0 : i32
    %c0_i32_1 = arith.constant 0 : i32
    return %c0_i32, %c0_i32_0 : i32, i32
  }
  func.func @transform_5(%arg0: i32) -> (i32, i32) {
    %c0_i32 = arith.constant 0 : i32
    %c0_i32_0 = arith.constant 0 : i32
    %c0_i32_1 = arith.constant 0 : i32
    return %c0_i32, %c0_i32_0 : i32, i32
  }
  func.func @transform_6(%arg0: i32) -> (i32, i32) {
    %c0_i32 = arith.constant 0 : i32
    %c0_i32_0 = arith.constant 0 : i32
    %c0_i32_1 = arith.constant 0 : i32
    return %c0_i32, %c0_i32_0 : i32, i32
  }
  func.func @transform_7(%arg0: i32) -> (i32, i32) {
    %c0_i32 = arith.constant 0 : i32
    %c0_i32_0 = arith.constant 0 : i32
    return %arg0, %c0_i32 : i32, i32
  }
}

</mosaic_0001>

<bundles_post_ra>
// kernel: tpu_custom_call.1
= control target key start
LH: loop header
LB: loop body
LE: loop exit
PB: predicated region body
PF: predicated region fallthrough
CT: control target
= control target key end

     0   :  { %12 = vsyncpa [#allocation3], 0  ;;  %s715_s0 = inlined_call_operand.hbm [shape: f32[16,128], index: 0, kind: input, shape index: {}]   ;;  %s716_s1 = inlined_call_operand.hbm [shape: bf16[128,128], index: 1, kind: input, shape index: {}]   ;;  %s717_s2 = inlined_call_operand.vmem [shape: f32[1,128], index: 2, kind: input, shape index: {}]   ;;  %s718_s3 = inlined_call_operand.hbm [shape: bf16[128,128], index: 3, kind: input, shape index: {}]   ;;  %s719_s4 = inlined_call_operand.vmem [shape: f32[1,128], index: 4, kind: input, shape index: {}]   ;;  %s720_s5 = inlined_call_operand.hbm [shape: bf16[128,128], index: 5, kind: input, shape index: {}]   ;;  %s721_s6 = inlined_call_operand.vmem [shape: f32[1,128], index: 6, kind: input, shape index: {}]   ;;  %s722_s7 = inlined_call_operand.hbm [shape: f32[16,128], index: 7, kind: output, shape index: {}]  }
   0x1   :  { %13 = vsyncpa [#allocation6], 0 }
   0x2   :  { %14 = vsyncpa [#allocation9], 0  ;;  %s33_s26 = sshll.u32 %s716_s1, 4  ;;  %s34_s26 = int_to_ptr.hbm [resolvable:$true] %s33_s26 }
   0x3   :  { %15 = vsyncpa [#allocation4], 0  ;;  %s636_s27 = smov [#allocation5]   ;;  %s20_s8 = sshll.u32 %s715_s0, 4  ;;  %s21_s8 = int_to_ptr.hbm [resolvable:$true] %s20_s8 }
   0x4   :  { %s35_s28 = sshll.u32 %s636_s27, 4  ;;  %s637_s9 = smov 64   ;;  %s36_s28 = int_to_ptr.vmem [resolvable:$true] %s35_s28 }
   0x5   :  { %s638_s10 = smov 4   ;;  %s639_s11 = smov [#allocation2]  }
   0x6   :  { %41 = dma.hbm_to_vmem [thread:$0]  %s34_s26, 1024, %s36_s28, [#allocation6], %s637_s9, %s637_s9, %s638_s10  }
   0x7   :  { %s22_s12 = sshll.u32 %s639_s11, 4  ;;  %s640_s13 = smov 128   ;;  %s23_s12 = int_to_ptr.vmem [resolvable:$true] %s22_s12 }
   0x8   :  { %s641_s14 = smov 8   ;;  %s48_s16 = sshll.u32 %s718_s3, 4  ;;  %s49_s16 = int_to_ptr.hbm [resolvable:$true] %s48_s16 }
   0x9   :  { %28 = dma.hbm_to_vmem [thread:$0]  %s21_s8, 256, %s23_s12, [#allocation3], %s640_s13, %s640_s13, %s641_s14  }
   0xa   :  { %s642_s17 = smov [#allocation7]   ;;  %s63_s20 = sshll.u32 %s720_s5, 4  ;;  %s64_s20 = int_to_ptr.hbm [resolvable:$true] %s63_s20 }
   0xb   :  { %s50_s0 = sshll.u32 %s642_s17, 4  ;;  %s643_s21 = smov [#allocation8]   ;;  %s51_s0 = int_to_ptr.vmem [resolvable:$true] %s50_s0 }
   0xc   :  { %56 = dma.hbm_to_vmem [thread:$0]  %s49_s16, 1024, %s51_s0, [#allocation6], %s637_s9, %s637_s9, %s638_s10  }
   0xd   :  { %s65_s22 = sshll.u32 %s643_s21, 4  ;;  %s66_s22 = int_to_ptr.vmem [resolvable:$true] %s65_s22 }
   0xe   :  { %71 = dma.hbm_to_vmem [thread:$0]  %s64_s20, 1024, %s66_s22, [#allocation9], %s637_s9, %s637_s9, %s638_s10  }
   0xf   :  { %628 = dma.done.wait [#allocation3], 256  }
  0x10   :  { %629 = vsyncadd [#allocation3], 4294967040 }
  0x11   :  { %630 = dma.done.wait [#allocation6], 2048  }
  0x12   :  { %631 = vsyncadd [#allocation6], 4294965248 }
  0x13   :  { %632 = dma.done.wait [#allocation9], 1024  }
  0x14   :  { %633 = vsyncadd [#allocation9], 4294966272  ;;  %v471_v0 = vld [vmem:[#allocation5 + $0x38] sm:$0xff]  ;;  %v470_v1 = vld [vmem:[#allocation5 + $0x30] sm:$0xff]  ;;  %s644_s26 = smov [#allocation10]   ;;  %s353_s29 = sshll.u32 %s722_s7, 4  ;;  %s354_s29 = int_to_ptr.hbm [resolvable:$true] %s353_s29 }
  0x15   :  { %161 = vmatpush.bf16.msra.mxu0 %v471_v0  ;;  %v479_v2 = vld [vmem:[#allocation7 + $0x38] sm:$0xff]  ;;  %v478_v3 = vld [vmem:[#allocation7 + $0x30] sm:$0xff]  ;;  %v469_v4 = vld [vmem:[#allocation5 + $0x28] sm:$0xff]  ;;  %s351_s27 = sshll.u32 %s644_s26, 4  ;;  %s352_s27 = int_to_ptr.vmem [resolvable:$true] %s351_s27 }
  0x16   :  { %246 = vmatpush.bf16.msra.mxu1 %v479_v2  ;;  %v477_v5 = vld [vmem:[#allocation7 + $0x28] sm:$0xff]  ;;  %v468_v6 = vld [vmem:[#allocation5 + $0x20] sm:$0xff]  ;;  %v467_v7 = vld [vmem:[#allocation5 + $0x18] sm:$0xff] }
  0x17   :  { %v466_v8 = vld [vmem:[#allocation5 + $0x10] sm:$0xff]  ;;  %v465_v9 = vld [vmem:[#allocation5 + $0x8] sm:$0xff]  ;;  %v464_v10 = vld [vmem:[#allocation5] sm:$0xff] }
  0x18   :  { %v90_v11 = vld [vmem:[#allocation2] sm:$0xff]  ;;  %v91_v12 = vld [vmem:[#allocation2 + $0x8] sm:$0xff]  ;;  %v476_v14 = vld [vmem:[#allocation7 + $0x20] sm:$0xff] }
  0x19   :  { %162 = vmatpush.bf16.msra.mxu0 %v470_v1  ;;  %v92_v13 = vpack.c.bf16 %v91_v12, %v90_v11  ;;  %v475_v15 = vld [vmem:[#allocation7 + $0x18] sm:$0xff]  ;;  %v474_v16 = vld [vmem:[#allocation7 + $0x10] sm:$0xff]  ;;  %v473_v17 = vld [vmem:[#allocation7 + $0x8] sm:$0xff] }
  0x1a   :  { %247 = vmatpush.bf16.msra.mxu1 %v478_v3  ;;  %v472_v18 = vld [vmem:[#allocation7] sm:$0xff]  ;;  %v487_v19 = vld [vmem:[#allocation8 + $0x38] sm:$0xff]  ;;  %v486_v20 = vld [vmem:[#allocation8 + $0x30] sm:$0xff] }
  0x1b   :  { %331 = vmatpush.bf16.msra.mxu2 %v487_v19  ;;  %v485_v21 = vld [vmem:[#allocation8 + $0x28] sm:$0xff]  ;;  %v497_v23 = vld [vmem:[%s717_s2] ss:$0 sm:$0xff]  ;;  %v484_v30 = vld [vmem:[#allocation8 + $0x20] sm:$0xff] }
  0x1c   :  { %v483_v31 = vld [vmem:[#allocation8 + $0x18] sm:$0xff]  ;;  %v482_v32 = vld [vmem:[#allocation8 + $0x10] sm:$0xff]  ;;  %v481_v33 = vld [vmem:[#allocation8 + $0x8] sm:$0xff] }
  0x1d   :  { %163 = vmatpush.bf16.msra.mxu0 %v469_v4  ;;  %v480_v34 = vld [vmem:[#allocation8] sm:$0xff]  ;;  %v498_v36 = vld [vmem:[%s719_s4] ss:$0 sm:$0xff] }
  0x1e   :  { %248 = vmatpush.bf16.msra.mxu1 %v477_v5  ;;  %v499_v43 = vld [vmem:[%s721_s6] ss:$0 sm:$0xff] }
  0x1f   :  { %332 = vmatpush.bf16.msra.mxu2 %v486_v20 }
  0x21   :  { %164 = vmatpush.bf16.msra.mxu0 %v468_v6 }
  0x22   :  { %249 = vmatpush.bf16.msra.mxu1 %v476_v14 }
  0x23   :  { %333 = vmatpush.bf16.msra.mxu2 %v485_v21 }
  0x25   :  { %165 = vmatpush.bf16.msra.mxu0 %v467_v7 }
  0x26   :  { %250 = vmatpush.bf16.msra.mxu1 %v475_v15 }
  0x27   :  { %334 = vmatpush.bf16.msra.mxu2 %v484_v30 }
  0x29   :  { %166 = vmatpush.bf16.msra.mxu0 %v466_v8 }
  0x2a   :  { %251 = vmatpush.bf16.msra.mxu1 %v474_v16 }
  0x2b   :  { %335 = vmatpush.bf16.msra.mxu2 %v483_v31 }
  0x2d   :  { %167 = vmatpush.bf16.msra.mxu0 %v465_v9 }
  0x2e   :  { %252 = vmatpush.bf16.msra.mxu1 %v473_v17 }
  0x2f   :  { %336 = vmatpush.bf16.msra.mxu2 %v482_v32 }
  0x31   :  { %168 = vmatpush.bf16.msra.mxu0 %v464_v10 }
  0x32   :  { %253 = vmatpush.bf16.msra.mxu1 %v472_v18 }
  0x33   :  { %337 = vmatpush.bf16.msra.mxu2 %v481_v33 }
  0x34   :  { %169 = vmatmul.bf16.vlgmr.msra.gmra.mxu0 %v92_v13 }
  0x37   :  { %338 = vmatpush.bf16.msra.mxu2 %v480_v34 }
  0xb1   :  { %v170_v22 = vpop.f32.mrf.mxu0 }
  0xb2   :  { %v171_v24 = vadd.f32 %v497_v23, %v170_v22 }
  0xb4   :  { %500 = vtanh.f32 %v171_v24 }
  0xb9   :  { %v172_v25 = vpop.f32.mrf.mxu0 }
  0xba   :  { %v173_v26 = vadd.f32 %v497_v23, %v172_v25  ;;  %v501_v27 = vpop.eup %500 }
  0xbc   :  { %502 = vtanh.f32 %v173_v26 }
  0xc2   :  { %v503_v28 = vpop.eup %502 }
  0xc3   :  { %v177_v29 = vpack.c.bf16 %v503_v28, %v501_v27 }
  0xc5   :  { %254 = vmatmul.bf16.vlgmr.msra.gmra.mxu1 %v177_v29 }
 0x142   :  { %v255_v35 = vpop.f32.mrf.mxu1 }
 0x143   :  { %v256_v37 = vadd.f32 %v498_v36, %v255_v35 }
 0x145   :  { %504 = vtanh.f32 %v256_v37 }
 0x14a   :  { %v257_v38 = vpop.f32.mrf.mxu1 }
 0x14b   :  { %v258_v39 = vadd.f32 %v498_v36, %v257_v38  ;;  %v505_v40 = vpop.eup %504 }
 0x14d   :  { %506 = vtanh.f32 %v258_v39 }
 0x153   :  { %v507_v41 = vpop.eup %506 }
 0x154   :  { %v262_v42 = vpack.c.bf16 %v507_v41, %v505_v40 }
 0x156   :  { %339 = vmatmul.bf16.vlgmr.msra.gmra.mxu2 %v262_v42 }
 0x1d9   :  { %v340_v44 = vpop.f32.mrf.mxu2 }
 0x1da   :  { %v341_v45 = vadd.f32 %v499_v43, %v340_v44 }
 0x1dc   :  { %345 = vst [vmem:[#allocation10] sm:$0xff] %v341_v45 }
 0x1e1   :  { %v342_v46 = vpop.f32.mrf.mxu2 }
 0x1e2   :  { %v343_v47 = vadd.f32 %v499_v43, %v342_v46 }
 0x1e4   :  { %346 = vst [vmem:[#allocation10 + $0x8] sm:$0xff] %v343_v47 }
 0x1e5   :  { %359 = dma.vmem_to_hbm [thread:$0]  %s352_s27, 256, %s354_s29, [#allocation4], %s640_s13, %s640_s13, %s641_s14  }
 0x1e6   :  { %634 = dma.done.wait [#allocation4], 256  }
 0x1e7   :  { %635 = vsyncadd [#allocation4], 4294967040 }
 0x1e8   :  { %364 = vsyncpa [#allocation3], 1 }
 0x1e9   :  { %365 = vsyncpa [#allocation6], 1 }
 0x1ea   :  { %366 = vsyncpa [#allocation9], 1 }
 0x1eb   :  { %367 = vsyncpa [#allocation4], 1 }

// kernel: tpu_custom_call.1
= control target key start
LH: loop header
LB: loop body
LE: loop exit
PB: predicated region body
PF: predicated region fallthrough
CT: control target
= control target key end

     0   :  { %12 = vsyncpa [#allocation3], 0  ;;  %s715_s0 = inlined_call_operand.hbm [shape: f32[16,128], index: 0, kind: input, shape index: {}]   ;;  %s716_s1 = inlined_call_operand.hbm [shape: bf16[128,128], index: 1, kind: input, shape index: {}]   ;;  %s717_s2 = inlined_call_operand.vmem [shape: f32[1,128], index: 2, kind: input, shape index: {}]   ;;  %s718_s3 = inlined_call_operand.hbm [shape: bf16[128,128], index: 3, kind: input, shape index: {}]   ;;  %s719_s4 = inlined_call_operand.vmem [shape: f32[1,128], index: 4, kind: input, shape index: {}]   ;;  %s720_s5 = inlined_call_operand.hbm [shape: bf16[128,128], index: 5, kind: input, shape index: {}]   ;;  %s721_s6 = inlined_call_operand.vmem [shape: f32[1,128], index: 6, kind: input, shape index: {}]   ;;  %s722_s7 = inlined_call_operand.hbm [shape: f32[16,128], index: 7, kind: output, shape index: {}]  }
   0x1   :  { %13 = vsyncpa [#allocation6], 0 }
   0x2   :  { %14 = vsyncpa [#allocation9], 0  ;;  %s33_s26 = sshll.u32 %s716_s1, 4  ;;  %s34_s26 = int_to_ptr.hbm [resolvable:$true] %s33_s26 }
   0x3   :  { %15 = vsyncpa [#allocation4], 0  ;;  %s636_s27 = smov [#allocation5]   ;;  %s20_s8 = sshll.u32 %s715_s0, 4  ;;  %s21_s8 = int_to_ptr.hbm [resolvable:$true] %s20_s8 }
   0x4   :  { %s35_s28 = sshll.u32 %s636_s27, 4  ;;  %s637_s9 = smov 64   ;;  %s36_s28 = int_to_ptr.vmem [resolvable:$true] %s35_s28 }
   0x5   :  { %s638_s10 = smov 4   ;;  %s639_s11 = smov [#allocation2]  }
   0x6   :  { %41 = dma.hbm_to_vmem [thread:$0]  %s34_s26, 1024, %s36_s28, [#allocation6], %s637_s9, %s637_s9, %s638_s10  }
   0x7   :  { %s22_s12 = sshll.u32 %s639_s11, 4  ;;  %s640_s13 = smov 128   ;;  %s23_s12 = int_to_ptr.vmem [resolvable:$true] %s22_s12 }
   0x8   :  { %s641_s14 = smov 8   ;;  %s48_s16 = sshll.u32 %s718_s3, 4  ;;  %s49_s16 = int_to_ptr.hbm [resolvable:$true] %s48_s16 }
   0x9   :  { %28 = dma.hbm_to_vmem [thread:$0]  %s21_s8, 256, %s23_s12, [#allocation3], %s640_s13, %s640_s13, %s641_s14  }
   0xa   :  { %s642_s17 = smov [#allocation7]   ;;  %s63_s20 = sshll.u32 %s720_s5, 4  ;;  %s64_s20 = int_to_ptr.hbm [resolvable:$true] %s63_s20 }
   0xb   :  { %s50_s0 = sshll.u32 %s642_s17, 4  ;;  %s643_s21 = smov [#allocation8]   ;;  %s51_s0 = int_to_ptr.vmem [resolvable:$true] %s50_s0 }
   0xc   :  { %56 = dma.hbm_to_vmem [thread:$0]  %s49_s16, 1024, %s51_s0, [#allocation6], %s637_s9, %s637_s9, %s638_s10  }
   0xd   :  { %s65_s22 = sshll.u32 %s643_s21, 4  ;;  %s66_s22 = int_to_ptr.vmem [resolvable:$true] %s65_s22 }
   0xe   :  { %71 = dma.hbm_to_vmem [thread:$0]  %s64_s20, 1024, %s66_s22, [#allocation9], %s637_s9, %s637_s9, %s638_s10  }
   0xf   :  { %628 = dma.done.wait [#allocation3], 256  }
  0x10   :  { %629 = vsyncadd [#allocation3], 4294967040 }
  0x11   :  { %630 = dma.done.wait [#allocation6], 2048  }
  0x12   :  { %631 = vsyncadd [#allocation6], 4294965248 }
  0x13   :  { %632 = dma.done.wait [#allocation9], 1024  }
  0x14   :  { %633 = vsyncadd [#allocation9], 4294966272  ;;  %v471_v0 = vld [vmem:[#allocation5 + $0x38] sm:$0xff]  ;;  %v470_v1 = vld [vmem:[#allocation5 + $0x30] sm:$0xff]  ;;  %s644_s26 = smov [#allocation10]   ;;  %s353_s29 = sshll.u32 %s722_s7, 4  ;;  %s354_s29 = int_to_ptr.hbm [resolvable:$true] %s353_s29 }
  0x15   :  { %161 = vmatpush.bf16.msra.mxu0 %v471_v0  ;;  %v479_v2 = vld [vmem:[#allocation7 + $0x38] sm:$0xff]  ;;  %v478_v3 = vld [vmem:[#allocation7 + $0x30] sm:$0xff]  ;;  %v469_v4 = vld [vmem:[#allocation5 + $0x28] sm:$0xff]  ;;  %s351_s27 = sshll.u32 %s644_s26, 4  ;;  %s352_s27 = int_to_ptr.vmem [resolvable:$true] %s351_s27 }
  0x16   :  { %246 = vmatpush.bf16.msra.mxu1 %v479_v2  ;;  %v477_v5 = vld [vmem:[#allocation7 + $0x28] sm:$0xff]  ;;  %v468_v6 = vld [vmem:[#allocation5 + $0x20] sm:$0xff]  ;;  %v467_v7 = vld [vmem:[#allocation5 + $0x18] sm:$0xff] }
  0x17   :  { %v466_v8 = vld [vmem:[#allocation5 + $0x10] sm:$0xff]  ;;  %v465_v9 = vld [vmem:[#allocation5 + $0x8] sm:$0xff]  ;;  %v464_v10 = vld [vmem:[#allocation5] sm:$0xff] }
  0x18   :  { %v90_v11 = vld [vmem:[#allocation2] sm:$0xff]  ;;  %v91_v12 = vld [vmem:[#allocation2 + $0x8] sm:$0xff]  ;;  %v476_v14 = vld [vmem:[#allocation7 + $0x20] sm:$0xff] }
  0x19   :  { %162 = vmatpush.bf16.msra.mxu0 %v470_v1  ;;  %v92_v13 = vpack.c.bf16 %v91_v12, %v90_v11  ;;  %v475_v15 = vld [vmem:[#allocation7 + $0x18] sm:$0xff]  ;;  %v474_v16 = vld [vmem:[#allocation7 + $0x10] sm:$0xff]  ;;  %v473_v17 = vld [vmem:[#allocation7 + $0x8] sm:$0xff] }
  0x1a   :  { %247 = vmatpush.bf16.msra.mxu1 %v478_v3  ;;  %v472_v18 = vld [vmem:[#allocation7] sm:$0xff]  ;;  %v487_v19 = vld [vmem:[#allocation8 + $0x38] sm:$0xff]  ;;  %v486_v20 = vld [vmem:[#allocation8 + $0x30] sm:$0xff] }
  0x1b   :  { %331 = vmatpush.bf16.msra.mxu2 %v487_v19  ;;  %v485_v21 = vld [vmem:[#allocation8 + $0x28] sm:$0xff]  ;;  %v497_v23 = vld [vmem:[%s717_s2] ss:$0 sm:$0xff]  ;;  %v484_v30 = vld [vmem:[#allocation8 + $0x20] sm:$0xff] }
  0x1c   :  { %v483_v31 = vld [vmem:[#allocation8 + $0x18] sm:$0xff]  ;;  %v482_v32 = vld [vmem:[#allocation8 + $0x10] sm:$0xff]  ;;  %v481_v33 = vld [vmem:[#allocation8 + $0x8] sm:$0xff] }
  0x1d   :  { %163 = vmatpush.bf16.msra.mxu0 %v469_v4  ;;  %v480_v34 = vld [vmem:[#allocation8] sm:$0xff]  ;;  %v498_v36 = vld [vmem:[%s719_s4] ss:$0 sm:$0xff] }
  0x1e   :  { %248 = vmatpush.bf16.msra.mxu1 %v477_v5  ;;  %v499_v43 = vld [vmem:[%s721_s6] ss:$0 sm:$0xff] }
  0x1f   :  { %332 = vmatpush.bf16.msra.mxu2 %v486_v20 }
  0x21   :  { %164 = vmatpush.bf16.msra.mxu0 %v468_v6 }
  0x22   :  { %249 = vmatpush.bf16.msra.mxu1 %v476_v14 }
  0x23   :  { %333 = vmatpush.bf16.msra.mxu2 %v485_v21 }
  0x25   :  { %165 = vmatpush.bf16.msra.mxu0 %v467_v7 }
  0x26   :  { %250 = vmatpush.bf16.msra.mxu1 %v475_v15 }
  0x27   :  { %334 = vmatpush.bf16.msra.mxu2 %v484_v30 }
  0x29   :  { %166 = vmatpush.bf16.msra.mxu0 %v466_v8 }
  0x2a   :  { %251 = vmatpush.bf16.msra.mxu1 %v474_v16 }
  0x2b   :  { %335 = vmatpush.bf16.msra.mxu2 %v483_v31 }
  0x2d   :  { %167 = vmatpush.bf16.msra.mxu0 %v465_v9 }
  0x2e   :  { %252 = vmatpush.bf16.msra.mxu1 %v473_v17 }
  0x2f   :  { %336 = vmatpush.bf16.msra.mxu2 %v482_v32 }
  0x31   :  { %168 = vmatpush.bf16.msra.mxu0 %v464_v10 }
  0x32   :  { %253 = vmatpush.bf16.msra.mxu1 %v472_v18 }
  0x33   :  { %337 = vmatpush.bf16.msra.mxu2 %v481_v33 }
  0x34   :  { %169 = vmatmul.bf16.vlgmr.msra.gmra.mxu0 %v92_v13 }
  0x37   :  { %338 = vmatpush.bf16.msra.mxu2 %v480_v34 }
  0xb1   :  { %v170_v22 = vpop.f32.mrf.mxu0 }
  0xb2   :  { %v171_v24 = vadd.f32 %v497_v23, %v170_v22 }
  0xb4   :  { %500 = vtanh.f32 %v171_v24 }
  0xb9   :  { %v172_v25 = vpop.f32.mrf.mxu0 }
  0xba   :  { %v173_v26 = vadd.f32 %v497_v23, %v172_v25  ;;  %v501_v27 = vpop.eup %500 }
  0xbc   :  { %502 = vtanh.f32 %v173_v26 }
  0xc2   :  { %v503_v28 = vpop.eup %502 }
  0xc3   :  { %v177_v29 = vpack.c.bf16 %v503_v28, %v501_v27 }
  0xc5   :  { %254 = vmatmul.bf16.vlgmr.msra.gmra.mxu1 %v177_v29 }
 0x142   :  { %v255_v35 = vpop.f32.mrf.mxu1 }
 0x143   :  { %v256_v37 = vadd.f32 %v498_v36, %v255_v35 }
 0x145   :  { %504 = vtanh.f32 %v256_v37 }
 0x14a   :  { %v257_v38 = vpop.f32.mrf.mxu1 }
 0x14b   :  { %v258_v39 = vadd.f32 %v498_v36, %v257_v38  ;;  %v505_v40 = vpop.eup %504 }
 0x14d   :  { %506 = vtanh.f32 %v258_v39 }
 0x153   :  { %v507_v41 = vpop.eup %506 }
 0x154   :  { %v262_v42 = vpack.c.bf16 %v507_v41, %v505_v40 }
 0x156   :  { %339 = vmatmul.bf16.vlgmr.msra.gmra.mxu2 %v262_v42 }
 0x1d9   :  { %v340_v44 = vpop.f32.mrf.mxu2 }
 0x1da   :  { %v341_v45 = vadd.f32 %v499_v43, %v340_v44 }
 0x1dc   :  { %345 = vst [vmem:[#allocation10] sm:$0xff] %v341_v45 }
 0x1e1   :  { %v342_v46 = vpop.f32.mrf.mxu2 }
 0x1e2   :  { %v343_v47 = vadd.f32 %v499_v43, %v342_v46 }
 0x1e4   :  { %346 = vst [vmem:[#allocation10 + $0x8] sm:$0xff] %v343_v47 }
 0x1e5   :  { %359 = dma.vmem_to_hbm [thread:$0]  %s352_s27, 256, %s354_s29, [#allocation4], %s640_s13, %s640_s13, %s641_s14  }
 0x1e6   :  { %634 = dma.done.wait [#allocation4], 256  }
 0x1e7   :  { %635 = vsyncadd [#allocation4], 4294967040 }
 0x1e8   :  { %364 = vsyncpa [#allocation3], 1 }
 0x1e9   :  { %365 = vsyncpa [#allocation6], 1 }
 0x1ea   :  { %366 = vsyncpa [#allocation9], 1 }
 0x1eb   :  { %367 = vsyncpa [#allocation4], 1 }

</bundles_post_ra>
